<compile_context>
chip_gen: v6e
topology: v6e:2x2x1
jax: 0.10.0
libtpu: 0.0.40
codegen_flags: <defaults>
</compile_context>

<pallas_src>
import jax
import jax.numpy as jnp
from jax.experimental import pallas as pl
from jax.experimental.pallas import tpu as pltpu


def _round_up(x, m):
    return ((x + m - 1) // m) * m


# ----------------------------------------------------------------------------
# Pallas kernel: one (TM, K) x-tile times the resident (K, N) guidance tile.
# ----------------------------------------------------------------------------
def _matmul_kernel(x_ref, d_ref, o_ref):
    o_ref[...] = jnp.dot(
        x_ref[...], d_ref[...], preferred_element_type=jnp.float32
    )


def _choose_tm(m_rows, k, n, tm_max):
    """Row-tile: big enough to amortize grid-step overhead, small enough for
    every generation's scoped-VMEM default, and >= 2 grid steps when the batch
    allows it so v7x's two TensorCores both get work."""
    if m_rows <= 8:
        return m_rows  # single full-extent block (allowed even if not %8)
    # Double-buffered x & out tiles stay well under the 16 MiB scoped default
    # (v5e); the resident D tile (k*n*4 B) sits on top.
    budget_bytes = 8 * 1024 * 1024
    tm = min(tm_max, max(8, budget_bytes // (2 * 4 * (k + n))))
    tm = max(8, (tm // 8) * 8)
    # Keep >= 2 grid steps for v7x's two TensorCores.
    tm = min(tm, _round_up(pl.cdiv(m_rows, 2), 8))
    return tm


def _pallas_matmul(x, d, *, tm_max=2048):
    """out = x @ d; M-tiled grid, D resident in VMEM across all grid steps,
    ragged last block handled by Pallas (no wrapper padding / slicing)."""
    m, k = x.shape
    k2, n = d.shape
    assert k == k2
    tm = _choose_tm(m, k, n, tm_max)
    grid = (pl.cdiv(m, tm),)

    return pl.pallas_call(
        _matmul_kernel,
        out_shape=jax.ShapeDtypeStruct((m, n), jnp.float32),
        grid_spec=pltpu.PrefetchScalarGridSpec(
            num_scalar_prefetch=0,
            grid=grid,
            in_specs=[
                pl.BlockSpec((tm, k), lambda i: (i, 0)),  # x: tiled over M
                pl.BlockSpec((k, n), lambda i: (0, 0)),   # D: resident
            ],
            out_specs=pl.BlockSpec((tm, n), lambda i: (i, 0)),
        ),
        compiler_params=pltpu.CompilerParams(
            dimension_semantics=("parallel",),
        ),
    )(x, d)


@jax.jit
def _matrix_d_forward(x, d_kernel):
    """x: (M, U) f32.  d_kernel: (f*U, f*U) block-diagonal guidance matrix,
    f = lane-fold factor (1 when no fold applies).  Returns (M, U)."""
    m, u = x.shape
    f = d_kernel.shape[0] // u
    if f > 1:
        m_pad = _round_up(m, f)
        if m_pad != m:
            # Tiny (< f rows) zero pad so the free contiguous row-fold reshape
            # is legal; only batches not divisible by f pay this extra x pass.
            x = jnp.pad(x, ((0, m_pad - m), (0, 0)))
        xk = x.reshape(m_pad // f, f * u)  # free reshape when no pad happened
    else:
        m_pad = m
        xk = x
    out = _pallas_matmul(xk, d_kernel)
    if f > 1:
        out = out.reshape(m_pad, u)
        if m_pad != m:
            out = out[:m]
    return out


# ----------------------------------------------------------------------------
# MatrixD module equivalent
# ----------------------------------------------------------------------------
def _gaussian_block(num_category, std):
    idx = jnp.arange(num_category, dtype=jnp.float32)
    return jnp.exp(-((idx[:, None] - idx[None, :]) ** 2) / float(std) ** 2)


class MatrixD:
    """JAX/Pallas port of the PyTorch MatrixD guidance-matrix module."""

    def __init__(self, num_factor, num_category, std=1, factor_mode=False):
        self.num_factor = num_factor
        self.num_category = num_category
        self.std = std
        self.factor_mode = factor_mode
        self.set_D(std)

    def set_D(self, std):
        self.std = std
        small = _gaussian_block(self.num_category, std)
        num_unit = self.num_factor * self.num_category
        eye_f = jnp.eye(self.num_factor, dtype=jnp.float32)
        # Buffer matching the PyTorch module's registered buffer `D`.
        if self.factor_mode:
            self.D = small                       # (C, C)
        else:
            self.D = jnp.kron(eye_f, small)      # (U, U) block-diagonal
        # Matmul operand: both modes are algebraically  x @ kron(I_F, small)
        # (the factor_mode per-group loop is exactly the block-diagonal form),
        # so they share one wide MXU pass.
        d_matmul = jnp.kron(eye_f, small)
        # Lane-fold: if U divides 128, fold f = 128 // U batch rows per kernel
        # row and use kron(I_f, d_matmul) = kron(I_{128//C}, small), a single
        # (128, 128) tile kept resident in VMEM.
        if num_unit > 0 and 128 % num_unit == 0:
            f = 128 // num_unit
            self._D_kernel = jnp.kron(jnp.eye(f, dtype=jnp.float32), d_matmul)
        else:
            # TODO(synk): U not dividing 128 falls back to the narrow
            # (lane-masked, N = U) output path.
            self._D_kernel = d_matmul

    def __call__(self, x):
        num_unit = self.num_factor * self.num_category
        assert x.shape[1] == num_unit
        return _matrix_d_forward(x, self._D_kernel)

    def __repr__(self):
        return "MatrixD (factors={}, categories={}, std={})".format(
            self.num_factor, self.num_category, self.std
        )


if __name__ == "__main__":
    key = jax.random.PRNGKey(0)

    num_factor, num_category, std = 4, 8, 1
    batch = 8
    num_unit = num_factor * num_category  # 32

    x = jax.random.normal(key, (batch, num_unit), dtype=jnp.float32)

    # factor_mode=False (default): x @ block-diagonal D
    mod = MatrixD(num_factor, num_category, std=std, factor_mode=False)
    out = jax.block_until_ready(mod(x))
    ref = x @ mod.D
    assert out.shape == (batch, num_unit)
    assert jnp.allclose(out, ref, atol=1e-5, rtol=1e-5)

    # factor_mode=True: equivalent to per-group matmul with small (C, C) D
    mod_f = MatrixD(num_factor, num_category, std=std, factor_mode=True)
    out_f = jax.block_until_ready(mod_f(x))
    ref_f = jnp.concatenate(
        [
            x[:, g * num_category : (g + 1) * num_category] @ mod_f.D
            for g in range(num_factor)
        ],
        axis=1,
    )
    assert out_f.shape == (batch, num_unit)
    assert jnp.allclose(out_f, ref_f, atol=1e-5, rtol=1e-5)

    # Larger odd batch: exercises the fold pad, multi-step grid and ragged
    # last block.
    x_big = jax.random.normal(key, (1030, num_unit), dtype=jnp.float32)
    out_big = jax.block_until_ready(mod(x_big))
    assert out_big.shape == (1030, num_unit)
    assert jnp.allclose(out_big, x_big @ mod.D, atol=1e-4, rtol=1e-4)

    print("KERNEL_OK")
</pallas_src>

<mosaic_0001>
module attributes {stable_mosaic.version = 11 : i64} {
  func.func @_matmul_kernel(%arg0: i32, %arg1: memref<2x128xf32, #tpu.memory_space<vmem>>, %arg2: memref<128x128xf32, #tpu.memory_space<vmem>>, %arg3: memref<2x128xf32, #tpu.memory_space<vmem>>) attributes {dimension_semantics = [#tpu.dimension_semantics<parallel>], iteration_bounds = array<i64: 1>, scalar_prefetch = 0 : i64, scratch_operands = 0 : i64, tpu.core_type = #tpu.core_type<tc>, window_params = [{transform_indices = @transform_0, window_bounds = array<i64: 2, 128>}, {pipeline_mode = #tpu.pipeline_mode<synchronous>, transform_indices = @transform_1, window_bounds = array<i64: 128, 128>}, {transform_indices = @transform_2, window_bounds = array<i64: 2, 128>}]} {
    %c0 = arith.constant 0 : index
    %c0_0 = arith.constant 0 : index
    %0 = vector.load %arg1[%c0, %c0_0] : memref<2x128xf32, #tpu.memory_space<vmem>>, vector<2x128xf32>
    %c0_1 = arith.constant 0 : index
    %c0_2 = arith.constant 0 : index
    %1 = vector.load %arg2[%c0_1, %c0_2] : memref<128x128xf32, #tpu.memory_space<vmem>>, vector<128x128xf32>
    %cst = arith.constant dense<0.000000e+00> : vector<2x128xf32>
    %2 = tpu.matmul %0, %1, %cst {dimension_numbers = #tpu.dot_dimension_numbers<[1], [0], [0], [1], [0, 0, 1, 1], [], []>} : vector<2x128xf32>, vector<128x128xf32>, vector<2x128xf32> -> vector<2x128xf32>
    %c0_3 = arith.constant 0 : index
    %c0_4 = arith.constant 0 : index
    %3 = vector.load %arg3[%c0_3, %c0_4] : memref<2x128xf32, #tpu.memory_space<vmem>>, vector<2x128xf32>
    tpu.vector_store %arg3[%c0_3, %c0_4], %2 {strides = array<i32>} : memref<2x128xf32, #tpu.memory_space<vmem>>, vector<2x128xf32>,
    return
  }
  func.func @transform_0(%arg0: i32) -> (i32, i32) {
    %c0_i32 = arith.constant 0 : i32
    %c0_i32_0 = arith.constant 0 : i32
    return %arg0, %c0_i32 : i32, i32
  }
  func.func @transform_1(%arg0: i32) -> (i32, i32) {
    %c0_i32 = arith.constant 0 : i32
    %c0_i32_0 = arith.constant 0 : i32
    %c0_i32_1 = arith.constant 0 : i32
    return %c0_i32, %c0_i32_0 : i32, i32
  }
  func.func @transform_2(%arg0: i32) -> (i32, i32) {
    %c0_i32 = arith.constant 0 : i32
    %c0_i32_0 = arith.constant 0 : i32
    return %arg0, %c0_i32 : i32, i32
  }
}

</mosaic_0001>

<bundles_post_ra>
// kernel: _matrix_d_forward.1
= control target key start
LH: loop header
LB: loop body
LE: loop exit
PB: predicated region body
PF: predicated region fallthrough
CT: control target
= control target key end

     0   :  { %7 = vsyncpa [#allocation3], 0  ;;  %s197_s9 = smov [#allocation2]   ;;  %s226_s0 = inlined_call_operand.vmem [shape: f32[2,128], index: 0, kind: input, shape index: {}]   ;;  %s227_s1 = inlined_call_operand.hbm [shape: f32[128,128], index: 1, kind: input, shape index: {}]   ;;  %s228_s2 = inlined_call_operand.vmem [shape: f32[2,128], index: 2, kind: output, shape index: {}]  }
   0x1   :  { %s15_s10 = sshll.u32 %s197_s9, 4  ;;  %s16_s10 = int_to_ptr.vmem [resolvable:$true] %s15_s10 }
   0x2   :  { %s183_s11 = scalar_lea.vmem %s16_s10, 2048  ;;  %p188_p1 = scmp.lt.s32.totalorder %s16_s10, %s16_s10 }
   0x3   :  { %p184_p0 = scmp.ne.s32.totalorder %s16_s10, %s183_s11  ;;  %p189_p2 = scmp.lt.s32.totalorder %s183_s11, %s183_s11 }
   0x5   :  { %p190_p3 = por %p189_p2, %p188_p1 }
   0x7   :  { %p191_p4 = pnand %p190_p3, %p184_p0 }
   0x9   :  { %194 = shalt.err (!%p191_p4)
}
   0xa   :  { %s198_s12 = smov 128   ;;  %s199_s13 = smov 8  }
   0xb   :  { %21 = dma.hbm_to_vmem [thread:$0]  %s227_s1, 2048, %s16_s10, [#allocation3], %s198_s12, %s198_s12, %s199_s13  }
   0xc   :  { %195 = dma.done.wait [#allocation3], 2048  }
   0xd   :  { %196 = vsyncadd [#allocation3], 4294965248  ;;  %v200_v0 = vmov 0.0   ;;  %vm201_vm0 = vmmov 0   ;;  %v41_v1 = vld [vmem:[#allocation2 + $0x78] sm:$0xff]  ;;  %v40_v2 = vld [vmem:[#allocation2 + $0x70] sm:$0xff] }
   0xe   :  { %135 = vmatprep.subr.mxu0 %v200_v0  ;;  %167 = vmatprep.mubr.msk.f32.mxu0 %vm201_vm0, %v200_v0  ;;  %v39_v3 = vld [vmem:[#allocation2 + $0x68] sm:$0xff]  ;;  %v38_v4 = vld [vmem:[#allocation2 + $0x60] sm:$0xff]  ;;  %v37_v5 = vld [vmem:[#allocation2 + $0x58] sm:$0xff] }
   0xf   :  { %136 = vmatpush3.msra.mxu0 %v41_v1  ;;  %v36_v6 = vld [vmem:[#allocation2 + $0x50] sm:$0xff]  ;;  %v35_v7 = vld [vmem:[#allocation2 + $0x48] sm:$0xff]  ;;  %v34_v8 = vld [vmem:[#allocation2 + $0x40] sm:$0xff] }
  0x10   :  { %137 = vmatprep.subr.mxu0 %v200_v0  ;;  %v33_v9 = vld [vmem:[#allocation2 + $0x38] sm:$0xff]  ;;  %v32_v10 = vld [vmem:[#allocation2 + $0x30] sm:$0xff]  ;;  %v31_v11 = vld [vmem:[#allocation2 + $0x28] sm:$0xff] }
  0x11   :  { %138 = vmatpush3.msra.mxu0 %v40_v2  ;;  %v30_v12 = vld [vmem:[#allocation2 + $0x20] sm:$0xff]  ;;  %v29_v13 = vld [vmem:[#allocation2 + $0x18] sm:$0xff]  ;;  %v28_v14 = vld [vmem:[#allocation2 + $0x10] sm:$0xff] }
  0x12   :  { %139 = vmatprep.subr.mxu0 %v200_v0  ;;  %v27_v15 = vld [vmem:[#allocation2 + $0x8] sm:$0xff]  ;;  %v26_v16 = vld [vmem:[#allocation2] sm:$0xff] }
  0x13   :  { %140 = vmatpush3.msra.mxu0 %v39_v3  ;;  %v25_v17 = vld [vmem:[%s226_s0] sm:$0x3] }
  0x14   :  { %141 = vmatprep.subr.mxu0 %v200_v0 }
  0x15   :  { %142 = vmatpush3.msra.mxu0 %v38_v4 }
  0x16   :  { %143 = vmatprep.subr.mxu0 %v200_v0 }
  0x17   :  { %144 = vmatpush3.msra.mxu0 %v37_v5 }
  0x18   :  { %145 = vmatprep.subr.mxu0 %v200_v0 }
  0x19   :  { %146 = vmatpush3.msra.mxu0 %v36_v6 }
  0x1a   :  { %147 = vmatprep.subr.mxu0 %v200_v0 }
  0x1b   :  { %148 = vmatpush3.msra.mxu0 %v35_v7 }
  0x1c   :  { %149 = vmatprep.subr.mxu0 %v200_v0 }
  0x1d   :  { %150 = vmatpush3.msra.mxu0 %v34_v8 }
  0x1e   :  { %151 = vmatprep.subr.mxu0 %v200_v0 }
  0x1f   :  { %152 = vmatpush3.msra.mxu0 %v33_v9 }
  0x20   :  { %153 = vmatprep.subr.mxu0 %v200_v0 }
  0x21   :  { %154 = vmatpush3.msra.mxu0 %v32_v10 }
  0x22   :  { %155 = vmatprep.subr.mxu0 %v200_v0 }
  0x23   :  { %156 = vmatpush3.msra.mxu0 %v31_v11 }
  0x24   :  { %157 = vmatprep.subr.mxu0 %v200_v0 }
  0x25   :  { %158 = vmatpush3.msra.mxu0 %v30_v12 }
  0x26   :  { %159 = vmatprep.subr.mxu0 %v200_v0 }
  0x27   :  { %160 = vmatpush3.msra.mxu0 %v29_v13 }
  0x28   :  { %161 = vmatprep.subr.mxu0 %v200_v0 }
  0x29   :  { %162 = vmatpush3.msra.mxu0 %v28_v14 }
  0x2a   :  { %163 = vmatprep.subr.mxu0 %v200_v0 }
  0x2b   :  { %164 = vmatpush3.msra.mxu0 %v27_v15 }
  0x2c   :  { %165 = vmatprep.subr.mxu0 %v200_v0 }
  0x2d   :  { %166 = vmatpush3.msra.mxu0 %v26_v16 }
  0x2e   :  { %168 = vmatmul.mubr.f32.vlgmr.msra.gmra.mxu0 %v25_v17 }
  0xee   :  { %v108_v18 = vpop.f32.mrf.mxu0 }
  0xef   :  { %112 = vst [vmem:[%s228_s2] sm:$0x3] %v108_v18 }
  0xf0   :  { %v169_v19 = vpop.f32.mrf.mxu0 }
  0xf1   :  { %117 = vsyncpa [#allocation3], 1 }

</bundles_post_ra>
